<compile_context>
chip_gen: v6e
topology: v6e:2x2x1
jax: 0.10.0
libtpu: 0.0.40
codegen_flags: <defaults>
</compile_context>

<pallas_src>
import functools

import jax
import jax.numpy as jnp
from jax.experimental import pallas as pl
from jax.experimental.pallas import tpu as pltpu


# ---------------------------------------------------------------------------
# Pallas kernel: entire forward pass as 4 fused matmuls + ReLUs
# ---------------------------------------------------------------------------
def data_based_kernel(
    x_ref,                    # (TB, 5)   input block (f32)
    w1_ref, b1_ref,           # (5, 128), (1, 128)   shared Linear(5->128)
    w2_ref, b2_ref,           # (128, 64), (1, 64)   shared Linear(128->64)
    wh_ref, bh_ref,           # (64, 96), (1, 96)    fused [wse | wc1 | wcf1]
    wo_ref, bo_ref,           # (96, 4),  (1, 4)     fused block-diag head weights
    out_ref,                  # (TB, 4)   columns = energy, cost, emission, comfort
):
    # MXU operand dtype comes from the packed weights (bf16 or f32).
    cdt = w1_ref.dtype

    # shared_layers: Linear -> ReLU -> (Dropout=id) -> Linear -> ReLU -> (Dropout=id)
    x = x_ref[...].astype(cdt)
    h1 = jnp.dot(x, w1_ref[...], preferred_element_type=jnp.float32) + b1_ref[...]
    h1 = jnp.maximum(h1, 0.0)
    shared = jnp.dot(h1.astype(cdt), w2_ref[...],
                     preferred_element_type=jnp.float32) + b2_ref[...]
    shared = jnp.maximum(shared, 0.0)

    # Fused head trunk: [see | c1 | cf1] = ReLU(shared @ [wse|wc1|wcf1] + [bse|bc1|bcf1])
    heads = jnp.dot(shared.astype(cdt), wh_ref[...],
                    preferred_element_type=jnp.float32) + bh_ref[...]
    heads = jnp.maximum(heads, 0.0)

    # Fused final projections: (TB, 96) @ (96, 4) block-structured weight.
    #   col 0 (energy)   uses rows  0:32 (wen)
    #   col 1 (cost)     uses rows 32:64 (wc2)
    #   col 2 (emission) uses rows  0:32 (wem)
    #   col 3 (comfort)  uses rows 64:96 (wcf2)
    out = jnp.dot(heads.astype(cdt), wo_ref[...],
                  preferred_element_type=jnp.float32) + bo_ref[...]
    out_ref[...] = out.astype(out_ref.dtype)


# ---------------------------------------------------------------------------
# One-time weight packing (outside the jitted forward)
# ---------------------------------------------------------------------------
def pack_params(params, *, use_bf16_mxu=True):
    """Concatenate/zero-pack the 9 Linear layers into 4 fused matmul operands."""
    wdt = jnp.bfloat16 if use_bf16_mxu else jnp.float32

    # Three 64->32 head matmuls fused into one 64->96.
    w_head = jnp.concatenate([params["wse"], params["wc1"], params["wcf1"]], axis=1)  # (64, 96)
    b_head = jnp.concatenate([params["bse"], params["bc1"], params["bcf1"]], axis=1)  # (1, 96)

    # Four 32->1 output matmuls fused into one block-structured (96, 4).
    z32 = jnp.zeros((32, 1), jnp.float32)
    col_energy   = jnp.concatenate([params["wen"], z32, z32], axis=0)   # reads 'see' block
    col_cost     = jnp.concatenate([z32, params["wc2"], z32], axis=0)   # reads 'c1'  block
    col_emission = jnp.concatenate([params["wem"], z32, z32], axis=0)   # reads 'see' block
    col_comfort  = jnp.concatenate([z32, z32, params["wcf2"]], axis=0)  # reads 'cf1' block
    w_out = jnp.concatenate([col_energy, col_cost, col_emission, col_comfort], axis=1)  # (96, 4)
    b_out = jnp.concatenate(
        [params["ben"], params["bc2"], params["bem"], params["bcf2"]], axis=1)          # (1, 4)

    return {
        "w1": params["w1"].astype(wdt), "b1": params["b1"].astype(jnp.float32),
        "w2": params["w2"].astype(wdt), "b2": params["b2"].astype(jnp.float32),
        "wh": w_head.astype(wdt),       "bh": b_head.astype(jnp.float32),
        "wo": w_out.astype(wdt),        "bo": b_out.astype(jnp.float32),
    }


def _round_up(n, m):
    return ((n + m - 1) // m) * m


# ---------------------------------------------------------------------------
# Jitted forward: batch-tiled pallas_call, returns packed (B, 4) output
# ---------------------------------------------------------------------------
@functools.partial(jax.jit, static_argnames=("block_b",))
def data_based_forward(x, packed, *, block_b=2048):
    """x: (B, 5) float32, packed: pack_params() output. Returns (B, 4) f32
    with columns [energy, cost, emission, comfort]."""
    B, in_dim = x.shape

    # Batch tile: big enough to amortize per-step overhead; when the whole batch would
    # otherwise be one step, split into >= 2 tiles so a 2-TC chip (v7x) can use both
    # TensorCores via the "parallel" grid axis.  TB is a multiple of 8 (or == B).
    if B > block_b:
        TB = block_b
    elif B >= 16:
        TB = _round_up(pl.cdiv(B, 2), 8)
    else:
        TB = B  # full-dim block (legal even when B is not a multiple of 8)
    grid = (pl.cdiv(B, TB),)

    def batch_map(i):
        return (i, 0)

    def resident_map(i):
        return (0, 0)

    weights = [packed["w1"], packed["b1"], packed["w2"], packed["b2"],
               packed["wh"], packed["bh"], packed["wo"], packed["bo"]]
    weight_specs = [
        pl.BlockSpec(w.shape, resident_map, memory_space=pltpu.VMEM) for w in weights
    ]

    in_specs = [pl.BlockSpec((TB, in_dim), batch_map, memory_space=pltpu.VMEM)] + weight_specs
    out_specs = pl.BlockSpec((TB, 4), batch_map, memory_space=pltpu.VMEM)

    weight_bytes = sum(int(w.size) * w.dtype.itemsize for w in weights)
    cost = pl.CostEstimate(
        flops=2 * B * (in_dim * 128 + 128 * 64 + 64 * 96 + 96 * 4),
        transcendentals=0,
        bytes_accessed=B * (in_dim + 4) * 4 + weight_bytes,
    )

    out = pl.pallas_call(
        data_based_kernel,
        out_shape=jax.ShapeDtypeStruct((B, 4), jnp.float32),
        grid=grid,
        in_specs=in_specs,
        out_specs=out_specs,
        compiler_params=pltpu.CompilerParams(dimension_semantics=("parallel",)),
        cost_estimate=cost,
    )(x, *weights)
    return out


def split_outputs(out):
    """(B, 4) -> (energy, cost, emission, comfort), each (B, 1)."""
    return out[:, 0:1], out[:, 1:2], out[:, 2:3], out[:, 3:4]


# ---------------------------------------------------------------------------
# Deterministic parameter init (synthetic, PyTorch-like fan_in scaling)
# ---------------------------------------------------------------------------
def init_params(key,
                input_size=5, hidden_size1=128, hidden_size2=64,
                shared_energy_emission_size=32, shared_comfort_size=32):
    def linear(key, fan_in, fan_out):
        kw, kb = jax.random.split(key)
        bound = 1.0 / jnp.sqrt(fan_in)
        w = jax.random.uniform(kw, (fan_in, fan_out), jnp.float32, -bound, bound)
        b = jax.random.uniform(kb, (1, fan_out), jnp.float32, -bound, bound)
        return w, b

    keys = jax.random.split(key, 9)
    p = {}
    p["w1"], p["b1"] = linear(keys[0], input_size, hidden_size1)
    p["w2"], p["b2"] = linear(keys[1], hidden_size1, hidden_size2)
    p["wse"], p["bse"] = linear(keys[2], hidden_size2, shared_energy_emission_size)
    p["wen"], p["ben"] = linear(keys[3], shared_energy_emission_size, 1)
    p["wc1"], p["bc1"] = linear(keys[4], hidden_size2, 32)
    p["wc2"], p["bc2"] = linear(keys[5], 32, 1)
    p["wem"], p["bem"] = linear(keys[6], shared_energy_emission_size, 1)
    p["wcf1"], p["bcf1"] = linear(keys[7], hidden_size2, shared_comfort_size)
    p["wcf2"], p["bcf2"] = linear(keys[8], shared_comfort_size, 1)
    # log_sigma parameter exists in the module but is not used in forward().
    p["log_sigma"] = jnp.zeros((4,), jnp.float32)
    return p


# ---------------------------------------------------------------------------
# Pure-JAX reference for correctness check (mxu_dtype mirrors the kernel path)
# ---------------------------------------------------------------------------
def reference_forward(x, p, mxu_dtype=jnp.float32):
    def mm(a, w):
        return jnp.dot(a.astype(mxu_dtype), w.astype(mxu_dtype),
                       preferred_element_type=jnp.float32)

    h1 = jnp.maximum(mm(x, p["w1"]) + p["b1"], 0.0)
    shared = jnp.maximum(mm(h1, p["w2"]) + p["b2"], 0.0)
    c1 = jnp.maximum(mm(shared, p["wc1"]) + p["bc1"], 0.0)
    cost = mm(c1, p["wc2"]) + p["bc2"]
    see = jnp.maximum(mm(shared, p["wse"]) + p["bse"], 0.0)
    energy = mm(see, p["wen"]) + p["ben"]
    emission = mm(see, p["wem"]) + p["bem"]
    cf1 = jnp.maximum(mm(shared, p["wcf1"]) + p["bcf1"], 0.0)
    comfort = mm(cf1, p["wcf2"]) + p["bcf2"]
    return energy, cost, emission, comfort


if __name__ == "__main__":
    key = jax.random.PRNGKey(0)
    kx, kp = jax.random.split(key)

    B, input_size = 8, 5
    x = jax.random.normal(kx, (B, input_size), jnp.float32)
    params = init_params(kp, input_size=input_size)

    # --- f32 MXU path: tight check against the pure-JAX f32 reference ---------
    packed_f32 = pack_params(params, use_bf16_mxu=False)
    out_f32 = jax.block_until_ready(data_based_forward(x, packed_f32))
    refs_f32 = reference_forward(x, params, mxu_dtype=jnp.float32)
    for o, r in zip(split_outputs(out_f32), refs_f32):
        assert o.shape == (B, 1)
        assert jnp.allclose(o, r, atol=1e-5, rtol=1e-5)

    # --- bf16 MXU path (perf default): check against bf16-operand reference ---
    packed_bf16 = pack_params(params, use_bf16_mxu=True)
    out_bf16 = jax.block_until_ready(data_based_forward(x, packed_bf16))
    refs_bf16 = reference_forward(x, params, mxu_dtype=jnp.bfloat16)
    for o, r in zip(split_outputs(out_bf16), refs_bf16):
        assert o.shape == (B, 1)
        assert jnp.allclose(o, r, atol=1e-3, rtol=1e-3)

    print("KERNEL_OK")
</pallas_src>

<mosaic_0001>
module attributes {stable_mosaic.version = 11 : i64} {
  func.func @data_based_kernel(%arg0: i32, %arg1: memref<8x5xf32, #tpu.memory_space<vmem>>, %arg2: memref<5x128xf32, #tpu.memory_space<vmem>>, %arg3: memref<1x128xf32, #tpu.memory_space<vmem>>, %arg4: memref<128x64xf32, #tpu.memory_space<vmem>>, %arg5: memref<1x64xf32, #tpu.memory_space<vmem>>, %arg6: memref<64x96xf32, #tpu.memory_space<vmem>>, %arg7: memref<1x96xf32, #tpu.memory_space<vmem>>, %arg8: memref<96x4xf32, #tpu.memory_space<vmem>>, %arg9: memref<1x4xf32, #tpu.memory_space<vmem>>, %arg10: memref<8x4xf32, #tpu.memory_space<vmem>>) attributes {dimension_semantics = [#tpu.dimension_semantics<parallel>], iteration_bounds = array<i64: 1>, scalar_prefetch = 0 : i64, scratch_operands = 0 : i64, tpu.core_type = #tpu.core_type<tc>, window_params = [{transform_indices = @transform_0, window_bounds = array<i64: 8, 5>}, {pipeline_mode = #tpu.pipeline_mode<synchronous>, transform_indices = @transform_1, window_bounds = array<i64: 5, 128>}, {pipeline_mode = #tpu.pipeline_mode<synchronous>, transform_indices = @transform_2, window_bounds = array<i64: 1, 128>}, {pipeline_mode = #tpu.pipeline_mode<synchronous>, transform_indices = @transform_3, window_bounds = array<i64: 128, 64>}, {pipeline_mode = #tpu.pipeline_mode<synchronous>, transform_indices = @transform_4, window_bounds = array<i64: 1, 64>}, {pipeline_mode = #tpu.pipeline_mode<synchronous>, transform_indices = @transform_5, window_bounds = array<i64: 64, 96>}, {pipeline_mode = #tpu.pipeline_mode<synchronous>, transform_indices = @transform_6, window_bounds = array<i64: 1, 96>}, {pipeline_mode = #tpu.pipeline_mode<synchronous>, transform_indices = @transform_7, window_bounds = array<i64: 96, 4>}, {pipeline_mode = #tpu.pipeline_mode<synchronous>, transform_indices = @transform_8, window_bounds = array<i64: 1, 4>}, {transform_indices = @transform_9, window_bounds = array<i64: 8, 4>}]} {
    %c0 = arith.constant 0 : index
    %c0_0 = arith.constant 0 : index
    %0 = vector.load %arg1[%c0, %c0_0] : memref<8x5xf32, #tpu.memory_space<vmem>>, vector<8x5xf32>
    %c0_1 = arith.constant 0 : index
    %c0_2 = arith.constant 0 : index
    %1 = vector.load %arg2[%c0_1, %c0_2] : memref<5x128xf32, #tpu.memory_space<vmem>>, vector<5x128xf32>
    %cst = arith.constant dense<0.000000e+00> : vector<8x128xf32>
    %2 = tpu.matmul %0, %1, %cst {dimension_numbers = #tpu.dot_dimension_numbers<[1], [0], [0], [1], [0, 0, 1, 1], [], []>} : vector<8x5xf32>, vector<5x128xf32>, vector<8x128xf32> -> vector<8x128xf32>
    %c0_3 = arith.constant 0 : index
    %c0_4 = arith.constant 0 : index
    %3 = vector.load %arg3[%c0_3, %c0_4] : memref<1x128xf32, #tpu.memory_space<vmem>>, vector<1x128xf32>
    %4 = vector.broadcast %3 : vector<1x128xf32> to vector<8x128xf32>
    %5 = arith.addf %2, %4 : vector<8x128xf32>
    %cst_5 = arith.constant 0.000000e+00 : f32
    %6 = vector.broadcast %cst_5 : f32 to vector<8x128xf32>
    %7 = arith.maximumf %5, %6 : vector<8x128xf32>
    %c0_6 = arith.constant 0 : index
    %c0_7 = arith.constant 0 : index
    %8 = vector.load %arg4[%c0_6, %c0_7] : memref<128x64xf32, #tpu.memory_space<vmem>>, vector<128x64xf32>
    %cst_8 = arith.constant dense<0.000000e+00> : vector<8x64xf32>
    %9 = tpu.matmul %7, %8, %cst_8 {dimension_numbers = #tpu.dot_dimension_numbers<[1], [0], [0], [1], [0, 0, 1, 1], [], []>} : vector<8x128xf32>, vector<128x64xf32>, vector<8x64xf32> -> vector<8x64xf32>
    %c0_9 = arith.constant 0 : index
    %c0_10 = arith.constant 0 : index
    %10 = vector.load %arg5[%c0_9, %c0_10] : memref<1x64xf32, #tpu.memory_space<vmem>>, vector<1x64xf32>
    %11 = vector.broadcast %10 : vector<1x64xf32> to vector<8x64xf32>
    %12 = arith.addf %9, %11 : vector<8x64xf32>
    %cst_11 = arith.constant 0.000000e+00 : f32
    %13 = vector.broadcast %cst_11 : f32 to vector<8x64xf32>
    %14 = arith.maximumf %12, %13 : vector<8x64xf32>
    %c0_12 = arith.constant 0 : index
    %c0_13 = arith.constant 0 : index
    %15 = vector.load %arg6[%c0_12, %c0_13] : memref<64x96xf32, #tpu.memory_space<vmem>>, vector<64x96xf32>
    %cst_14 = arith.constant dense<0.000000e+00> : vector<8x96xf32>
    %16 = tpu.matmul %14, %15, %cst_14 {dimension_numbers = #tpu.dot_dimension_numbers<[1], [0], [0], [1], [0, 0, 1, 1], [], []>} : vector<8x64xf32>, vector<64x96xf32>, vector<8x96xf32> -> vector<8x96xf32>
    %c0_15 = arith.constant 0 : index
    %c0_16 = arith.constant 0 : index
    %17 = vector.load %arg7[%c0_15, %c0_16] : memref<1x96xf32, #tpu.memory_space<vmem>>, vector<1x96xf32>
    %18 = vector.broadcast %17 : vector<1x96xf32> to vector<8x96xf32>
    %19 = arith.addf %16, %18 : vector<8x96xf32>
    %cst_17 = arith.constant 0.000000e+00 : f32
    %20 = vector.broadcast %cst_17 : f32 to vector<8x96xf32>
    %21 = arith.maximumf %19, %20 : vector<8x96xf32>
    %c0_18 = arith.constant 0 : index
    %c0_19 = arith.constant 0 : index
    %22 = vector.load %arg8[%c0_18, %c0_19] : memref<96x4xf32, #tpu.memory_space<vmem>>, vector<96x4xf32>
    %cst_20 = arith.constant dense<0.000000e+00> : vector<8x4xf32>
    %23 = tpu.matmul %21, %22, %cst_20 {dimension_numbers = #tpu.dot_dimension_numbers<[1], [0], [0], [1], [0, 0, 1, 1], [], []>} : vector<8x96xf32>, vector<96x4xf32>, vector<8x4xf32> -> vector<8x4xf32>
    %c0_21 = arith.constant 0 : index
    %c0_22 = arith.constant 0 : index
    %24 = vector.load %arg9[%c0_21, %c0_22] : memref<1x4xf32, #tpu.memory_space<vmem>>, vector<1x4xf32>
    %25 = vector.broadcast %24 : vector<1x4xf32> to vector<8x4xf32>
    %26 = arith.addf %23, %25 : vector<8x4xf32>
    %c0_23 = arith.constant 0 : index
    %c0_24 = arith.constant 0 : index
    %27 = vector.load %arg10[%c0_23, %c0_24] : memref<8x4xf32, #tpu.memory_space<vmem>>, vector<8x4xf32>
    tpu.vector_store %arg10[%c0_23, %c0_24], %26 {strides = array<i32>} : memref<8x4xf32, #tpu.memory_space<vmem>>, vector<8x4xf32>,
    return
  }
  func.func @transform_0(%arg0: i32) -> (i32, i32) {
    %c0_i32 = arith.constant 0 : i32
    %c0_i32_0 = arith.constant 0 : i32
    return %arg0, %c0_i32 : i32, i32
  }
  func.func @transform_1(%arg0: i32) -> (i32, i32) {
    %c0_i32 = arith.constant 0 : i32
    %c0_i32_0 = arith.constant 0 : i32
    %c0_i32_1 = arith.constant 0 : i32
    return %c0_i32, %c0_i32_0 : i32, i32
  }
  func.func @transform_2(%arg0: i32) -> (i32, i32) {
    %c0_i32 = arith.constant 0 : i32
    %c0_i32_0 = arith.constant 0 : i32
    %c0_i32_1 = arith.constant 0 : i32
    return %c0_i32, %c0_i32_0 : i32, i32
  }
  func.func @transform_3(%arg0: i32) -> (i32, i32) {
    %c0_i32 = arith.constant 0 : i32
    %c0_i32_0 = arith.constant 0 : i32
    %c0_i32_1 = arith.constant 0 : i32
    return %c0_i32, %c0_i32_0 : i32, i32
  }
  func.func @transform_4(%arg0: i32) -> (i32, i32) {
    %c0_i32 = arith.constant 0 : i32
    %c0_i32_0 = arith.constant 0 : i32
    %c0_i32_1 = arith.constant 0 : i32
    return %c0_i32, %c0_i32_0 : i32, i32
  }
  func.func @transform_5(%arg0: i32) -> (i32, i32) {
    %c0_i32 = arith.constant 0 : i32
    %c0_i32_0 = arith.constant 0 : i32
    %c0_i32_1 = arith.constant 0 : i32
    return %c0_i32, %c0_i32_0 : i32, i32
  }
  func.func @transform_6(%arg0: i32) -> (i32, i32) {
    %c0_i32 = arith.constant 0 : i32
    %c0_i32_0 = arith.constant 0 : i32
    %c0_i32_1 = arith.constant 0 : i32
    return %c0_i32, %c0_i32_0 : i32, i32
  }
  func.func @transform_7(%arg0: i32) -> (i32, i32) {
    %c0_i32 = arith.constant 0 : i32
    %c0_i32_0 = arith.constant 0 : i32
    %c0_i32_1 = arith.constant 0 : i32
    return %c0_i32, %c0_i32_0 : i32, i32
  }
  func.func @transform_8(%arg0: i32) -> (i32, i32) {
    %c0_i32 = arith.constant 0 : i32
    %c0_i32_0 = arith.constant 0 : i32
    %c0_i32_1 = arith.constant 0 : i32
    return %c0_i32, %c0_i32_0 : i32, i32
  }
  func.func @transform_9(%arg0: i32) -> (i32, i32) {
    %c0_i32 = arith.constant 0 : i32
    %c0_i32_0 = arith.constant 0 : i32
    return %arg0, %c0_i32 : i32, i32
  }
}

</mosaic_0001>

<bundles_post_ra>
// kernel: data_based_forward.1
= control target key start
LH: loop header
LB: loop body
LE: loop exit
PB: predicated region body
PF: predicated region fallthrough
CT: control target
= control target key end

     0   :  { %vm45_vm0 = vcmask 1044480   ;;  %vm41_vm1 = vcmask 39936   ;;  %v540_v0 = vmov 0.0   ;;  %vm541_vm2 = vmmov 0   ;;  %s766_s1 = inlined_call_operand.vmem [shape: f32[5,128], index: 1, kind: input, shape index: {}]   ;;  %s767_s0 = inlined_call_operand.vmem [shape: f32[8,5], index: 0, kind: input, shape index: {}]   ;;  %s768_s3 = inlined_call_operand.vmem [shape: f32[128,64], index: 3, kind: input, shape index: {}]   ;;  %s769_s5 = inlined_call_operand.vmem [shape: f32[64,96], index: 5, kind: input, shape index: {}]   ;;  %s770_s2 = inlined_call_operand.vmem [shape: f32[1,128], index: 2, kind: input, shape index: {}]   ;;  %s771_s4 = inlined_call_operand.vmem [shape: f32[1,64], index: 4, kind: input, shape index: {}]   ;;  %s772_s7 = inlined_call_operand.vmem [shape: f32[96,4], index: 7, kind: input, shape index: {}]   ;;  %s773_s6 = inlined_call_operand.vmem [shape: f32[1,96], index: 6, kind: input, shape index: {}]   ;;  %s774_s8 = inlined_call_operand.vmem [shape: f32[1,4], index: 8, kind: input, shape index: {}]   ;;  %s775_s9 = inlined_call_operand.vmem [shape: f32[8,4], index: 9, kind: output, shape index: {}]  }
   0x1   :  { %452 = vmatprep.subr.mxu1 %v540_v0  ;;  %v33_v1 = vld [vmem:[%s766_s1] sm:$0x1f]  ;;  %454 = vmatprep.mubr.msk.f32.mxu1 %vm541_vm2, %v540_v0  ;;  %v135_v3 = vld [vmem:[%s768_s3 + $0x78] sm:$0xff]  ;;  %v134_v4 = vld [vmem:[%s768_s3 + $0x70] sm:$0xff]  ;;  %vm229_vm3 = vcmask 523264   ;;  %vm323_vm4 = vcmask 785408  }
   0x2   :  { %v32_v2 = vld [vmem:[%s767_s0] sm:$0xff]  ;;  %453 = vmatpush3.msk.msra.mxu1 %vm45_vm0, %v33_v1  ;;  %492 = vmatprep.subr.mxu0 %v540_v0  ;;  %v133_v5 = vld [vmem:[%s768_s3 + $0x68] sm:$0xff]  ;;  %v131_v7 = vld [vmem:[%s768_s3 + $0x58] sm:$0xff]  ;;  %vm397_vm5 = vcmask 31744  }
   0x3   :  { %455 = vmatmul.mubr.msk.f32.vlgmr.msra.gmra.mxu1 %vm41_vm1, %v32_v2  ;;  %457 = vmatprep.subr.mxu1 %v540_v0  ;;  %v132_v6 = vld [vmem:[%s768_s3 + $0x60] sm:$0xff]  ;;  %v130_v8 = vld [vmem:[%s768_s3 + $0x50] sm:$0xff]  ;;  %v129_v9 = vld [vmem:[%s768_s3 + $0x48] sm:$0xff] }
   0x4   :  { %458 = vmatpush3.msra.mxu1 %v135_v3  ;;  %489 = vmatprep.mubr.msk.f32.mxu1 %vm541_vm2, %v540_v0  ;;  %v128_v10 = vld [vmem:[%s768_s3 + $0x40] sm:$0xff]  ;;  %v127_v11 = vld [vmem:[%s768_s3 + $0x38] sm:$0xff]  ;;  %v126_v12 = vld [vmem:[%s768_s3 + $0x30] sm:$0xff] }
   0x5   :  { %459 = vmatprep.subr.mxu1 %v540_v0  ;;  %508 = vmatprep.mubr.msk.f32.mxu0 %vm541_vm2, %v540_v0  ;;  %v125_v13 = vld [vmem:[%s768_s3 + $0x28] sm:$0xff]  ;;  %v124_v14 = vld [vmem:[%s768_s3 + $0x20] sm:$0xff]  ;;  %v123_v15 = vld [vmem:[%s768_s3 + $0x18] sm:$0xff] }
   0x6   :  { %460 = vmatpush3.msra.mxu1 %v134_v4  ;;  %v122_v16 = vld [vmem:[%s768_s3 + $0x10] sm:$0xff]  ;;  %v121_v17 = vld [vmem:[%s768_s3 + $0x8] sm:$0xff]  ;;  %v120_v18 = vld [vmem:[%s768_s3] sm:$0xff] }
   0x7   :  { %461 = vmatprep.subr.mxu1 %v540_v0  ;;  %v221_v19 = vld [vmem:[%s769_s5 + $0x38] sm:$0xff]  ;;  %v220_v20 = vld [vmem:[%s769_s5 + $0x30] sm:$0xff]  ;;  %v219_v21 = vld [vmem:[%s769_s5 + $0x28] sm:$0xff] }
   0x8   :  { %462 = vmatpush3.msra.mxu1 %v133_v5  ;;  %493 = vmatpush3.msra.mxu0 %v221_v19  ;;  %v218_v22 = vld [vmem:[%s769_s5 + $0x20] sm:$0xff]  ;;  %v217_v23 = vld [vmem:[%s769_s5 + $0x18] sm:$0xff]  ;;  %v216_v29 = vld [vmem:[%s769_s5 + $0x10] sm:$0xff] }
   0x9   :  { %463 = vmatprep.subr.mxu1 %v540_v0  ;;  %494 = vmatprep.subr.mxu0 %v540_v0  ;;  %v403_v24 = vld [vmem:[%s770_s2] ss:$0 sm:$0xff]  ;;  %v215_v30 = vld [vmem:[%s769_s5 + $0x8] sm:$0xff]  ;;  %v315_v37 = vld [vmem:[%s772_s7 + $0x58] sm:$0xff] }
   0xa   :  { %464 = vmatpush3.msra.mxu1 %v132_v6  ;;  %495 = vmatpush3.msra.mxu0 %v220_v20  ;;  %v214_v31 = vld [vmem:[%s769_s5] sm:$0xff]  ;;  %v314_v38 = vld [vmem:[%s772_s7 + $0x50] sm:$0xff]  ;;  %v313_v39 = vld [vmem:[%s772_s7 + $0x48] sm:$0xff] }
   0xb   :  { %465 = vmatprep.subr.mxu1 %v540_v0  ;;  %496 = vmatprep.subr.mxu0 %v540_v0  ;;  %v406_v32 = vld [vmem:[%s771_s4] ss:$0 sm:$0xff]  ;;  %v311_v41 = vld [vmem:[%s772_s7 + $0x38] sm:$0xff]  ;;  %v310_v42 = vld [vmem:[%s772_s7 + $0x30] sm:$0xff] }
   0xc   :  { %466 = vmatpush3.msra.mxu1 %v131_v7  ;;  %497 = vmatpush3.msra.mxu0 %v219_v21  ;;  %v312_v40 = vld [vmem:[%s772_s7 + $0x40] sm:$0xff]  ;;  %v309_v43 = vld [vmem:[%s772_s7 + $0x28] sm:$0xff]  ;;  %v307_v45 = vld [vmem:[%s772_s7 + $0x18] sm:$0xff] }
   0xd   :  { %467 = vmatprep.subr.mxu1 %v540_v0  ;;  %498 = vmatprep.subr.mxu0 %v540_v0  ;;  %v308_v44 = vld [vmem:[%s772_s7 + $0x20] sm:$0xff]  ;;  %v306_v46 = vld [vmem:[%s772_s7 + $0x10] sm:$0xff]  ;;  %v305_v47 = vld [vmem:[%s772_s7 + $0x8] sm:$0xff] }
   0xe   :  { %468 = vmatpush3.msra.mxu1 %v130_v8  ;;  %499 = vmatpush3.msra.mxu0 %v218_v22  ;;  %v304_v48 = vld [vmem:[%s772_s7] sm:$0xff] }
   0xf   :  { %469 = vmatprep.subr.mxu1 %v540_v0  ;;  %500 = vmatprep.subr.mxu0 %v540_v0  ;;  %v407_v49 = vld [vmem:[%s773_s6] ss:$0 sm:$0xff] }
  0x10   :  { %470 = vmatpush3.msra.mxu1 %v129_v9  ;;  %501 = vmatpush3.msra.mxu0 %v217_v23  ;;  %v409_v54 = vld [vmem:[%s774_s8] ss:$0 sm:$0xff] }
  0x11   :  { %471 = vmatprep.subr.mxu1 %v540_v0  ;;  %502 = vmatprep.subr.mxu0 %v540_v0 }
  0x12   :  { %472 = vmatpush3.msra.mxu1 %v128_v10  ;;  %503 = vmatpush3.msra.mxu0 %v216_v29 }
  0x13   :  { %473 = vmatprep.subr.mxu1 %v540_v0  ;;  %504 = vmatprep.subr.mxu0 %v540_v0 }
  0x14   :  { %474 = vmatpush3.msra.mxu1 %v127_v11  ;;  %505 = vmatpush3.msra.mxu0 %v215_v30 }
  0x15   :  { %475 = vmatprep.subr.mxu1 %v540_v0  ;;  %506 = vmatprep.subr.mxu0 %v540_v0 }
  0x16   :  { %476 = vmatpush3.msra.mxu1 %v126_v12  ;;  %507 = vmatpush3.msra.mxu0 %v214_v31 }
  0x17   :  { %477 = vmatprep.subr.mxu1 %v540_v0  ;;  %511 = vmatprep.subr.mxu0 %v540_v0 }
  0x18   :  { %478 = vmatpush3.msra.mxu1 %v125_v13 }
  0x19   :  { %479 = vmatprep.subr.mxu1 %v540_v0 }
  0x1a   :  { %480 = vmatpush3.msra.mxu1 %v124_v14 }
  0x1b   :  { %481 = vmatprep.subr.mxu1 %v540_v0 }
  0x1c   :  { %482 = vmatpush3.msra.mxu1 %v123_v15 }
  0x1d   :  { %483 = vmatprep.subr.mxu1 %v540_v0 }
  0x1e   :  { %484 = vmatpush3.msra.mxu1 %v122_v16 }
  0x1f   :  { %485 = vmatprep.subr.mxu1 %v540_v0 }
  0x20   :  { %486 = vmatpush3.msra.mxu1 %v121_v17 }
  0x21   :  { %487 = vmatprep.subr.mxu1 %v540_v0 }
  0x22   :  { %488 = vmatpush3.msra.mxu1 %v120_v18 }
  0xc3   :  { %v115_v25 = vpop.f32.mrf.mxu1 }
  0xc4   :  { %v116_v26 = vadd.f32 %v403_v24, %v115_v25 }
  0xc5   :  { %v456_v27 = vpop.f32.mrf.mxu1 }
  0xc6   :  { %v119_v28 = vmax.f32 %v116_v26, 0.0 }
  0xc8   :  { %490 = vmatmul.mubr.f32.vlgmr.msra.gmra.mxu1 %v119_v28 }
 0x188   :  { %v209_v33 = vpop.f32.mrf.mxu1 }
 0x189   :  { %v210_v34 = vadd.f32 %v406_v32, %v209_v33 }
 0x18a   :  { %v491_v35 = vpop.f32.mrf.mxu1 }
 0x18b   :  { %v213_v36 = vmax.f32 %v210_v34, 0.0 }
 0x18d   :  { %509 = vmatmul.mubr.msk.f32.vlgmr.msra.gmra.mxu0 %vm229_vm3, %v213_v36 }
 0x18e   :  { %512 = vmatpush3.msra.mxu0 %v315_v37  ;;  %535 = vmatprep.mubr.msk.f32.mxu0 %vm541_vm2, %v540_v0 }
 0x18f   :  { %513 = vmatprep.subr.mxu0 %v540_v0 }
 0x190   :  { %514 = vmatpush3.msra.mxu0 %v314_v38 }
 0x191   :  { %515 = vmatprep.subr.mxu0 %v540_v0 }
 0x192   :  { %516 = vmatpush3.msra.mxu0 %v313_v39 }
 0x193   :  { %517 = vmatprep.subr.mxu0 %v540_v0 }
 0x194   :  { %518 = vmatpush3.msra.mxu0 %v312_v40 }
 0x195   :  { %519 = vmatprep.subr.mxu0 %v540_v0 }
 0x196   :  { %520 = vmatpush3.msra.mxu0 %v311_v41 }
 0x197   :  { %521 = vmatprep.subr.mxu0 %v540_v0 }
 0x198   :  { %522 = vmatpush3.msra.mxu0 %v310_v42 }
 0x199   :  { %523 = vmatprep.subr.mxu0 %v540_v0 }
 0x19a   :  { %524 = vmatpush3.msra.mxu0 %v309_v43 }
 0x19b   :  { %525 = vmatprep.subr.mxu0 %v540_v0 }
 0x19c   :  { %526 = vmatpush3.msra.mxu0 %v308_v44 }
 0x19d   :  { %527 = vmatprep.subr.mxu0 %v540_v0 }
 0x19e   :  { %528 = vmatpush3.msra.mxu0 %v307_v45 }
 0x19f   :  { %529 = vmatprep.subr.mxu0 %v540_v0 }
 0x1a0   :  { %530 = vmatpush3.msra.mxu0 %v306_v46 }
 0x1a1   :  { %531 = vmatprep.subr.mxu0 %v540_v0 }
 0x1a2   :  { %532 = vmatpush3.msra.mxu0 %v305_v47 }
 0x1a3   :  { %533 = vmatprep.subr.mxu0 %v540_v0 }
 0x1a4   :  { %534 = vmatpush3.msra.mxu0 %v304_v48 }
 0x24d   :  { %v299_v50 = vpop.f32.mrf.mxu0 }
 0x24e   :  { %v300_v51 = vadd.f32 %v407_v49, %v299_v50 }
 0x24f   :  { %v510_v52 = vpop.f32.mrf.mxu0 }
 0x250   :  { %v303_v53 = vmax.f32 %v300_v51, 0.0 }
 0x252   :  { %536 = vmatmul.mubr.msk.f32.vlgmr.msra.gmra.mxu0 %vm323_vm4, %v303_v53 }
 0x312   :  { %v393_v55 = vpop.f32.mrf.mxu0 }
 0x313   :  { %v394_v56 = vadd.f32 %v409_v54, %v393_v55 }
 0x314   :  { %v537_v57 = vpop.f32.mrf.mxu0 }
 0x315   :  { %398 = vst.msk [vmem:[%s775_s9] sm:$0xff] %vm397_vm5, %v394_v56 }

</bundles_post_ra>
